<compile_context>
chip_gen: v7x
topology: tpu7x:2x2x1
jax: 0.10.0
libtpu: 0.0.40
codegen_flags: <defaults>
</compile_context>

<pallas_src>
import jax
import jax.numpy as jnp
from jax import lax
from jax.experimental import pallas as pl
from jax.experimental.pallas import tpu as pltpu


def _round_up(n: int, m: int) -> int:
    return ((n + m - 1) // m) * m


def _pick_tile_b(batch: int, tile_b: int) -> int:
    """Batch tile: == B for small batches (block dim == full array dim is
    always legal), otherwise a multiple of 512 with >= 2 grid steps so v7x's
    two TensorCores both get work."""
    if batch <= 1024:
        return batch
    half = _round_up((batch + 1) // 2, 512)
    return min(tile_b, half)


def value_net_kernel(x_ref, w1_ref, b1_ref, w2_ref, b2_ref, o_ref):
    """One batch tile.

    x_ref : (tb, state_dim) f32   natural PyTorch layout, batch on sublanes
    w1_ref: (hidden, state_dim) f32   == fc1.weight [out, in]
    b1_ref: (hidden, 1)         f32
    w2_ref: (hidden, 1)         f32   == fc2.weight.T
    b2_ref: (1,)                f32   SMEM scalar
    o_ref : (1, tb)             f32   lane-dense output
    """
    tb = x_ref.shape[0]
    # Process the tile in 512-lane chunks so h = (hidden, chunk) stays
    # vreg-resident (hidden=32, chunk=512 -> 16 vregs) instead of spilling a
    # (hidden, tb) block through VMEM.  Starts are static Python ints, so the
    # stores are aligned, unmasked vst's.
    chunk = 512 if tb % 512 == 0 else tb
    n_chunks = tb // chunk

    w1 = w1_ref[...]
    b1 = b1_ref[...]
    w2 = w2_ref[...]
    b2 = b2_ref[0]

    for c in range(n_chunks):
        start = c * chunk
        xc = x_ref[pl.ds(start, chunk), :]                      # (chunk, state)
        # MXU: contract over x's minor (state) dim directly -> (hidden, chunk),
        # batch on the lane axis.
        h = lax.dot_general(
            w1, xc,
            dimension_numbers=(((1,), (1,)), ((), ())),
            preferred_element_type=jnp.float32,
        )
        h = jnp.maximum(h + b1, 0.0)
        # Layer 2 has output width 1: VPU mul + XLU sublane reduce.
        v = jnp.sum(h * w2, axis=0, keepdims=True) + b2         # (1, chunk)
        o_ref[:, pl.ds(start, chunk)] = v.astype(o_ref.dtype)


def value_net_forward(x, w1, b1, w2, b2, *, tile_b=4096):
    """x: (B, state_dim); w1: (hidden, state_dim); b1: (hidden, 1);
       w2: (hidden, 1); b2: (1,).  Returns (B, 1) = fc2(relu(fc1(x)))."""
    B, state_dim = x.shape
    hidden = w1.shape[0]
    dtype = x.dtype
    bytes_el = x.dtype.itemsize

    tb = _pick_tile_b(B, tile_b)
    grid = (pl.cdiv(B, tb),)

    cost = pl.CostEstimate(
        flops=2 * B * hidden * (state_dim + 1),
        transcendentals=0,
        bytes_accessed=(B * (state_dim + 1)
                        + hidden * (state_dim + 2) + 1) * bytes_el,
    )

    out = pl.pallas_call(
        value_net_kernel,
        out_shape=jax.ShapeDtypeStruct((1, B), dtype),
        grid=grid,
        in_specs=[
            # x tile in its natural layout; Pallas masks the partial last block.
            pl.BlockSpec((tb, state_dim), lambda i: (i, 0)),
            # Weights / biases: constant index_maps -> VMEM-resident across
            # batch tiles (no re-DMA per grid step).
            pl.BlockSpec((hidden, state_dim), lambda i: (0, 0)),
            pl.BlockSpec((hidden, 1), lambda i: (0, 0)),
            pl.BlockSpec((hidden, 1), lambda i: (0, 0)),
            # b2: single scalar in SMEM (1-D so it doesn't pad to a 2-D tile).
            pl.BlockSpec(memory_space=pltpu.MemorySpace.SMEM),
        ],
        # Lane-dense (1, tb) output slab -> unmasked stores.
        out_specs=pl.BlockSpec((1, tb), lambda i: (0, i)),
        compiler_params=pltpu.CompilerParams(
            # Batch tiles are independent -> shard across TensorCores on v7x.
            dimension_semantics=("parallel",),
        ),
        cost_estimate=cost,
    )(x, w1, b1, w2, b2)

    # (1, B) -> (B, 1): size-1 dim, so this is a free reshape (no transpose).
    return out.reshape(B, 1)


def init_value_net_params(key, state_dim, hidden_dim, dtype=jnp.float32):
    """Mimics torch.nn.Linear's U(-1/sqrt(fan_in), 1/sqrt(fan_in)) init.

      w1: (hidden, state_dim)  (== fc1.weight),   b1: (hidden, 1)
      w2: (hidden, 1)          (== fc2.weight.T), b2: (1,)
    """
    k1, k2, k3, k4 = jax.random.split(key, 4)
    bound1 = 1.0 / float(state_dim) ** 0.5
    bound2 = 1.0 / float(hidden_dim) ** 0.5
    w1 = jax.random.uniform(k1, (hidden_dim, state_dim), dtype, -bound1, bound1)
    b1 = jax.random.uniform(k2, (hidden_dim, 1), dtype, -bound1, bound1)
    w2 = jax.random.uniform(k3, (hidden_dim, 1), dtype, -bound2, bound2)
    b2 = jax.random.uniform(k4, (1,), dtype, -bound2, bound2)
    return w1, b1, w2, b2


if __name__ == "__main__":
    key = jax.random.PRNGKey(0)
    k_params, k_x = jax.random.split(key)

    batch = 8
    state_dim = 4
    hidden_dim = 32

    w1, b1, w2, b2 = init_value_net_params(k_params, state_dim, hidden_dim)
    x = jax.random.normal(k_x, (batch, state_dim), dtype=jnp.float32)

    out = value_net_forward(x, w1, b1, w2, b2)
    out = jax.block_until_ready(out)

    # Reference check in plain JAX (same math as the PyTorch forward).
    ref = jnp.maximum(x @ w1.T + b1.T, 0.0) @ w2 + b2
    assert out.shape == (batch, 1)
    assert jnp.allclose(out, ref, atol=1e-5, rtol=1e-5)

    print("KERNEL_OK")
</pallas_src>

<mosaic_0001>
module attributes {stable_mosaic.version = 11 : i64} {
  func.func @value_net_kernel(%arg0: i32, %arg1: memref<8x4xf32, #tpu.memory_space<vmem>>, %arg2: memref<32x4xf32, #tpu.memory_space<vmem>>, %arg3: memref<32x1xf32, #tpu.memory_space<vmem>>, %arg4: memref<32x1xf32, #tpu.memory_space<vmem>>, %arg5: memref<1xf32, #tpu.memory_space<smem>>, %arg6: memref<1x8xf32, #tpu.memory_space<vmem>>) attributes {dimension_semantics = [#tpu.dimension_semantics<parallel>], iteration_bounds = array<i64: 1>, scalar_prefetch = 0 : i64, scratch_operands = 0 : i64, tpu.core_type = #tpu.core_type<tc>, window_params = [{transform_indices = @transform_0, window_bounds = array<i64: 8, 4>}, {pipeline_mode = #tpu.pipeline_mode<synchronous>, transform_indices = @transform_1, window_bounds = array<i64: 32, 4>}, {pipeline_mode = #tpu.pipeline_mode<synchronous>, transform_indices = @transform_2, window_bounds = array<i64: 32, 1>}, {pipeline_mode = #tpu.pipeline_mode<synchronous>, transform_indices = @transform_3, window_bounds = array<i64: 32, 1>}, {transform_indices = @transform_4, window_bounds = array<i64: 1>}, {transform_indices = @transform_5, window_bounds = array<i64: 1, 8>}]} {
    %c0 = arith.constant 0 : index
    %c0_0 = arith.constant 0 : index
    %0 = vector.load %arg2[%c0, %c0_0] : memref<32x4xf32, #tpu.memory_space<vmem>>, vector<32x4xf32>
    %c0_1 = arith.constant 0 : index
    %c0_2 = arith.constant 0 : index
    %1 = vector.load %arg3[%c0_1, %c0_2] : memref<32x1xf32, #tpu.memory_space<vmem>>, vector<32x1xf32>
    %c0_3 = arith.constant 0 : index
    %c0_4 = arith.constant 0 : index
    %2 = vector.load %arg4[%c0_3, %c0_4] : memref<32x1xf32, #tpu.memory_space<vmem>>, vector<32x1xf32>
    %c0_5 = arith.constant 0 : index
    %3 = memref.load %arg5[%c0_5] : memref<1xf32, #tpu.memory_space<smem>>
    %c0_6 = arith.constant 0 : index
    %c0_7 = arith.constant 0 : index
    %4 = vector.load %arg1[%c0_6, %c0_7] : memref<8x4xf32, #tpu.memory_space<vmem>>, vector<8x4xf32>
    %cst = arith.constant dense<0.000000e+00> : vector<32x8xf32>
    %5 = tpu.matmul %0, %4, %cst {dimension_numbers = #tpu.dot_dimension_numbers<[1], [1], [0], [0], [0, 0, 1, 0], [], []>} : vector<32x4xf32>, vector<8x4xf32>, vector<32x8xf32> -> vector<32x8xf32>
    %6 = vector.broadcast %1 : vector<32x1xf32> to vector<32x8xf32>
    %7 = arith.addf %5, %6 : vector<32x8xf32>
    %cst_8 = arith.constant 0.000000e+00 : f32
    %8 = vector.broadcast %cst_8 : f32 to vector<32x8xf32>
    %9 = arith.maximumf %7, %8 : vector<32x8xf32>
    %10 = vector.broadcast %2 : vector<32x1xf32> to vector<32x8xf32>
    %11 = arith.mulf %9, %10 : vector<32x8xf32>
    %cst_9 = arith.constant dense<0.000000e+00> : vector<8xf32>
    %12 = vector.multi_reduction <add>, %11, %cst_9 [0] : vector<32x8xf32> to vector<8xf32>
    %13 = vector.shape_cast %12 : vector<8xf32> to vector<1x8xf32>
    %14 = vector.broadcast %3 : f32 to vector<1x8xf32>
    %15 = arith.addf %13, %14 : vector<1x8xf32>
    %c0_10 = arith.constant 0 : index
    %c0_11 = arith.constant 0 : index
    %16 = vector.load %arg6[%c0_10, %c0_11] : memref<1x8xf32, #tpu.memory_space<vmem>>, vector<1x8xf32>
    tpu.vector_store %arg6[%c0_10, %c0_11], %15 {strides = array<i32>} : memref<1x8xf32, #tpu.memory_space<vmem>>, vector<1x8xf32>,
    return
  }
  func.func @transform_0(%arg0: i32) -> (i32, i32) {
    %c0_i32 = arith.constant 0 : i32
    %c0_i32_0 = arith.constant 0 : i32
    return %arg0, %c0_i32 : i32, i32
  }
  func.func @transform_1(%arg0: i32) -> (i32, i32) {
    %c0_i32 = arith.constant 0 : i32
    %c0_i32_0 = arith.constant 0 : i32
    %c0_i32_1 = arith.constant 0 : i32
    return %c0_i32, %c0_i32_0 : i32, i32
  }
  func.func @transform_2(%arg0: i32) -> (i32, i32) {
    %c0_i32 = arith.constant 0 : i32
    %c0_i32_0 = arith.constant 0 : i32
    %c0_i32_1 = arith.constant 0 : i32
    return %c0_i32, %c0_i32_0 : i32, i32
  }
  func.func @transform_3(%arg0: i32) -> (i32, i32) {
    %c0_i32 = arith.constant 0 : i32
    %c0_i32_0 = arith.constant 0 : i32
    %c0_i32_1 = arith.constant 0 : i32
    return %c0_i32, %c0_i32_0 : i32, i32
  }
  func.func @transform_4(%arg0: i32) -> i32 {
    %c0_i32 = arith.constant 0 : i32
    %c0_i32_0 = arith.constant 0 : i32
    return %c0_i32 : i32
  }
  func.func @transform_5(%arg0: i32) -> (i32, i32) {
    %c0_i32 = arith.constant 0 : i32
    %c0_i32_0 = arith.constant 0 : i32
    return %c0_i32, %arg0 : i32, i32
  }
}

</mosaic_0001>

<bundles_post_ra>
// kernel: tpu_custom_call.1
= control target key start
LH: loop header
LB: loop body
LE: loop exit
PB: predicated region body
PF: predicated region fallthrough
CT: control target
= control target key end

     0   :  { %vm56_vm0 = vcmask 31744   ;;  %v265_v7 = vmov 0   ;;  %s359_s0 = inlined_call_operand.vmem [shape: f32[8,4], index: 0, kind: input, shape index: {}]   ;;  %s360_s1 = inlined_call_operand.vmem [shape: f32[32,4], index: 1, kind: input, shape index: {}]   ;;  %s361_s2 = inlined_call_operand.vmem [shape: f32[32,1], index: 2, kind: input, shape index: {}]   ;;  %s362_s3 = inlined_call_operand.vmem [shape: f32[32,1], index: 3, kind: input, shape index: {}]   ;;  %s363_s4 = inlined_call_operand.<no memory space> [shape: f32[1], index: 4, kind: input, shape index: {}]   ;;  %s364_s5 = inlined_call_operand.hbm [shape: f32[1,8], index: 5, kind: output, shape index: {}]  }
   0x1   :  { %v35_v0 = vld [vmem:[%s359_s0] sm:$0xff]  ;;  %v24_v2 = vld [vmem:[%s360_s1 + $0x10] sm:$0xff]  ;;  %v23_v3 = vld [vmem:[%s360_s1 + $0x8] sm:$0xff]  ;;  %239 = vset.pattern.permute.xlu0 %v265_v7  ;;  %240 = vset.pattern.permute.xlu1 %v265_v7 }
   0x2   :  { %v22_v1 = vld [vmem:[%s360_s1] sm:$0xff]  ;;  %227 = vmatprep.subr.msk.mxu0 %vm56_vm0, %v35_v0  ;;  %235 = vmatprep.subr.msk.mxu1 %vm56_vm0, %v35_v0  ;;  %v25_v4 = vld [vmem:[%s360_s1 + $0x18] sm:$0xff]  ;;  %v28_v6 = vld [vmem:[%s361_s2 + $0x10] sm:$0xff] }
   0x3   :  { %228 = vmatpush3.xpose.msk.msra.mxu0 %vm56_vm0, %v35_v0  ;;  %236 = vmatpush3.xpose.msk.msra.mxu1 %vm56_vm0, %v35_v0  ;;  %v26_v5 = vld [vmem:[%s361_s2] sm:$0xff] }
   0x4   :  { %229 = vmatprep.mubr.msk.f32.mxu0 %vm56_vm0, %v22_v1  ;;  %232 = vmatprep.mubr.msk.f32.mxu1 %vm56_vm0, %v24_v2 }
   0x5   :  { %11 = vsyncpa [#allocation4], 0  ;;  %38 = vperm.xlu0 %239, %v26_v5   ;;  %48 = vperm.xlu1 %240, %v28_v6   ;;  %v27_v8 = vld [vmem:[%s361_s2 + $0x8] sm:$0xff]  ;;  %v29_v9 = vld [vmem:[%s361_s2 + $0x18] sm:$0xff]  ;;  %vm185_vm1 = vcmask 64512   ;;  %v199_v50 = vstv %s363_s4  ;;  %s266_s17 = smov [#allocation3]  }
   0x6   :  { %230 = vmatmul.mubr.msk.f32.vlgmr.msra.gmra.mrb[0].mxu0 %vm56_vm0, %v23_v3  ;;  %233 = vmatmul.mubr.msk.f32.vlgmr.msra.gmra.mrb[0].mxu1 %vm56_vm0, %v25_v4  ;;  %v30_v10 = vld [vmem:[%s362_s3] sm:$0xff]  ;;  %v31_v11 = vld [vmem:[%s362_s3 + $0x8] sm:$0xff]  ;;  %v32_v12 = vld [vmem:[%s362_s3 + $0x10] sm:$0xff]  ;;  %s209_s18 = sshll.u32 %s266_s17, 4  ;;  %vm201_vm2 = vcmask 57344   ;;  %s210_s18 = int_to_ptr.vmem [resolvable:$true] %s209_s18 }
   0x7   :  { %v33_v13 = vld [vmem:[%s362_s3 + $0x18] sm:$0xff]  ;;  %s241_s19 = scalar_lea.vmem %s210_s18, 16  ;;  %s245_s20 = scalar_lea.vmem %s210_s18, 32 }
   0x8   :  { %p242_p0 = scmp.ne.s32.totalorder %s210_s18, %s241_s19  ;;  %p246_p1 = scmp.lt.s32.totalorder %s210_s18, %s210_s18 }
   0x9   :  { %43 = vperm.xlu0 %239, %v27_v8   ;;  %53 = vperm.xlu1 %240, %v29_v9   ;;  %p247_p2 = scmp.lt.s32.totalorder %s245_s20, %s241_s19 }
   0xb   :  { %p248_p3 = por %p247_p2, %p246_p1 }
   0xd   :  { %163 = vperm.xlu0 %239, %v30_v10   ;;  %168 = vperm.xlu1 %240, %v31_v11   ;;  %p249_p4 = pnand %p248_p3, %p242_p0 }
  0x11   :  { %173 = vperm.xlu0 %239, %v32_v12   ;;  %178 = vperm.xlu1 %240, %v33_v13  }
  0x84   :  { %v39_v14 = vpop.permute.xlu0 %38  ;;  %v49_v15 = vpop.permute.xlu1 %48 }
  0x88   :  { %v44_v16 = vpop.permute.xlu0 %43  ;;  %v54_v17 = vpop.permute.xlu1 %53 }
  0x8c   :  { %v164_v18 = vpop.permute.xlu0 %163  ;;  %v169_v19 = vpop.permute.xlu1 %168 }
  0x90   :  { %v174_v32 = vpop.permute.xlu0 %173  ;;  %v179_v36 = vpop.permute.xlu1 %178 }
  0xd9   :  { %v231_v20 = vpop.f32.mrb[0].mxu0  ;;  %v234_v21 = vpop.f32.mrb[0].mxu1 }
  0xda   :  { %v144_v22 = vadd.f32 %v231_v20, %v44_v16  ;;  %v154_v23 = vadd.f32 %v234_v21, %v54_v17  ;;  %v138_v24 = vpop.f32.mrb[1].mxu0  ;;  %v148_v25 = vpop.f32.mrb[1].mxu1 }
  0xdb   :  { %v139_v26 = vadd.f32 %v138_v24, %v39_v14  ;;  %v149_v27 = vadd.f32 %v148_v25, %v49_v15 }
  0xdc   :  { %v158_v28 = vmax.f32 %v144_v22, 0.0  ;;  %v160_v29 = vmax.f32 %v154_v23, 0.0 }
  0xdd   :  { %v157_v30 = vmax.f32 %v139_v26, 0.0  ;;  %v159_v31 = vmax.f32 %v149_v27, 0.0 }
  0xde   :  { %v182_v33 = vmul.f32 %v169_v19, %v158_v28  ;;  %v184_v38 = vmul.f32 %v179_v36, %v160_v29 }
  0xdf   :  { %v181_v34 = vmul.f32 %v164_v18, %v157_v30  ;;  %v183_v35 = vmul.f32 %v174_v32, %v159_v31 }
  0xe0   :  { %v187_v37 = vsel %vm185_vm1, %v182_v33, 0.0  ;;  %v191_v43 = vsel %vm185_vm1, %v184_v38, 0.0 }
  0xe1   :  { %v186_v39 = vsel %vm185_vm1, %v181_v34, 0.0  ;;  %v189_v41 = vsel %vm185_vm1, %v183_v35, 0.0 }
  0xe2   :  { %v188_v40 = vadd.f32 %v187_v37, %v186_v39 }
  0xe4   :  { %v190_v42 = vadd.f32 %v189_v41, %v188_v40 }
  0xe6   :  { %v192_v44 = vadd.f32 %v191_v43, %v190_v42 }
  0xe8   :  { %v193_v45 = vrot.slane %v192_v44, 4 }
  0xea   :  { %v194_v46 = vadd.f32 %v193_v45, %v192_v44 }
  0xec   :  { %v195_v47 = vrot.slane %v194_v46, 2 }
  0xee   :  { %v196_v48 = vadd.f32 %v195_v47, %v194_v46 }
  0xf0   :  { %v197_v49 = vrot.slane %v196_v48, 1 }
  0xf2   :  { %v198_v51 = vadd.f32 %v197_v49, %v196_v48 }
  0xf4   :  { %v200_v52 = vadd.f32 %v199_v50, %v198_v51 }
  0xf6   :  { %202 = vst.msk [vmem:[#allocation3] sm:$0x1] %vm201_vm2, %v200_v52 }
  0xf7   :  { %252 = shalt.err (!%p249_p4)
}
  0xf8   :  { %s253_s23 = scalar_lea.hbm %s364_s5, 16 }
  0xf9   :  { %p254_p5 = scmp.ne.s32.totalorder %s364_s5, %s253_s23  ;;  %p257_p6 = scmp.lt.u32.totalorder %s253_s23, %s364_s5 }
  0xfb   :  { %p259_p7 = pnand %p257_p6, %p254_p5 }
  0xfd   :  { %262 = shalt.err (!%p259_p7)
}
  0xfe   :  { %212 = dma.vmem_to_hbm [thread:$0]  %s210_s18, 16, %s364_s5, [#allocation4]  }
  0xff   :  { %263 = dma.done.wait [#allocation4], 16  }
 0x100   :  { %264 = vsyncadd [#allocation4], 4294967280 }
 0x101   :  { %216 = vsyncpa [#allocation4], 1 }

</bundles_post_ra>
